<compile_context>
chip_gen: v6e
topology: v6e:2x2x1
jax: 0.10.0
libtpu: 0.0.40
codegen_flags: <defaults>
</compile_context>

<pallas_src>
import math

import jax
import jax.numpy as jnp
import numpy as np
from jax.experimental import pallas as pl
from jax.experimental.pallas import tpu as pltpu

jax.config.update("jax_default_matmul_precision", "highest")

_SMALL_BATCH_CUTOFF = 4096  # below this, plain XLA beats kernel launch cost


# ----------------------------------------------------------------------------
# Config mirroring the PyTorch `indata` class
# ----------------------------------------------------------------------------
class InData:
    def __init__(self):
        self.Ts = 0.25
        self.Tr = 0.2
        self.mass = 39.15342
        self.zH = 0.7
        self.g = 9.81
        self.w = 0.13
        self.stance_leg = 1
        self.Lx_offset = 0.0
        self.Ly_des = 1.0


def _cdiv(a: int, b: int) -> int:
    return (a + b - 1) // b


def _round_up(x: int, m: int) -> int:
    return _cdiv(x, m) * m


# ----------------------------------------------------------------------------
# Pallas kernel: one tiny MXU matmul per lane-dense batch tile.
#   packed_ref : (8, TB)  rows = [state_T(4); u_T(2); ones(1); zeros(1)]
#   coef_ref   : (4, 8)   C_T = [exp_At^T | (B@exp_At)^T | -des^T | 0]
#   out_ref    : (4, TB)  out_T
# ----------------------------------------------------------------------------
def alip_forward_kernel(packed_ref, coef_ref, out_ref):
    out_ref[...] = jnp.dot(
        coef_ref[...],
        packed_ref[...],
        preferred_element_type=jnp.float32,
        precision=jax.lax.Precision.HIGHEST,
    )


def alip_forward_packed(packed, coef, tb):
    """packed: (8, padded) f32 (padded % tb == 0); coef: (4, 8) f32.

    Returns out_T: (4, padded) f32. Lane-dense, batch on the 128-lane axis.
    """
    padded = packed.shape[1]
    assert padded % tb == 0 and tb % 128 == 0
    return pl.pallas_call(
        alip_forward_kernel,
        out_shape=jax.ShapeDtypeStruct((4, padded), jnp.float32),
        grid=(padded // tb,),
        in_specs=[
            pl.BlockSpec((8, tb), lambda i: (0, i)),   # packed inputs tile
            pl.BlockSpec((4, 8), lambda i: (0, 0)),    # coefficient constant
        ],
        out_specs=pl.BlockSpec((4, tb), lambda i: (0, i)),
        compiler_params=pltpu.CompilerParams(
            dimension_semantics=("parallel",)),
    )(packed, coef)


def _pick_tile(n_batch: int, block_batch: int):
    """Balanced lane tile: multiple of 128, <= block_batch, minimal tail waste."""
    n128 = _round_up(max(n_batch, 1), 128)
    num_tiles = _cdiv(n128, block_batch)
    tb = _round_up(_cdiv(n128, num_tiles), 128)
    padded = tb * num_tiles
    return tb, padded


def _pack_inputs(state, u, padded):
    """Build the (8, padded) lane-dense packed input in a single concat + pad."""
    n = state.shape[0]
    ones = jnp.ones((1, n), jnp.float32)
    zero = jnp.zeros((1, n), jnp.float32)
    packed = jnp.concatenate(
        [state.T.astype(jnp.float32), u.T.astype(jnp.float32), ones, zero],
        axis=0)                                                   # (8, n)
    if padded != n:
        packed = jnp.pad(packed, ((0, 0), (0, padded - n)))
    return packed


def alip_forward(state, u, coef, *, block_batch=128 * 1024, use_pallas=None):
    """out = state @ exp_At + u @ (B @ exp_At) - des  (coef-folded form)."""
    n_batch = state.shape[0]
    if use_pallas is None:
        use_pallas = n_batch >= _SMALL_BATCH_CUTOFF
    if not use_pallas:
        # Small-batch fast path: launch + layout overhead dominates a kernel.
        exp_At_T = coef[:, :4].T
        b_exp_At_T = coef[:, 4:6].T
        neg_des = coef[:, 6]
        return (jnp.dot(state.astype(jnp.float32), exp_At_T)
                + jnp.dot(u.astype(jnp.float32), b_exp_At_T)
                + neg_des[None, :])

    tb, padded = _pick_tile(n_batch, block_batch)
    packed = _pack_inputs(state, u, padded)
    out_t = alip_forward_packed(packed, coef, tb)
    return out_t[:, :n_batch].T


# ----------------------------------------------------------------------------
# JAX port of ALIP_error_model (forward pass), parameters built on the host
# ----------------------------------------------------------------------------
class ALIPErrorModel:
    def __init__(self, Ns, Nt, ind: InData, n_batch: int, *,
                 block_batch=128 * 1024, use_pallas=None):
        self.Ns, self.Nt, self.n_batch = Ns, Nt, n_batch
        self.block_batch = block_batch
        self.use_pallas = use_pallas
        dt = ind.Ts / Nt
        m, zH, g = ind.mass, ind.zH, 9.81

        A = jnp.array(
            [[0.0, 0.0, 0.0, 1.0 / m / zH],
             [0.0, 0.0, -1.0 / m / zH, 0.0],
             [0.0, -m * g, 0.0, 0.0],
             [m * g, 0.0, 0.0, 0.0]], dtype=jnp.float32).T
        self.B = jnp.array(
            [[-1.0, 0.0], [0.0, -1.0], [0.0, 0.0], [0.0, 0.0]],
            dtype=jnp.float32).T                                    # (2, 4)
        self.exp_At = jax.scipy.linalg.expm(A * dt).astype(jnp.float32)
        # Fold the chained matmuls: (state + u@B) @ exp_At
        #                         == state @ exp_At + u @ (B @ exp_At)
        self.b_exp_At = jnp.dot(self.B, self.exp_At,
                                precision=jax.lax.Precision.HIGHEST)

        l = math.sqrt(g / zH)
        x_des = 1.0 / m / zH / l * math.tanh(l * ind.Ts / 2.0) * ind.Ly_des
        lx_mag = 0.5 * m * zH * l * ind.w * math.sqrt(l * ind.Ts * 0.5)
        self.des_plus = jnp.array(
            [[x_des, -ind.w / 2.0, lx_mag + ind.Lx_offset, ind.Ly_des]],
            dtype=jnp.float32)
        self.des_minus = jnp.array(
            [[x_des, ind.w / 2.0, -lx_mag + ind.Lx_offset, ind.Ly_des]],
            dtype=jnp.float32)

        # Stacked coefficient constants consumed by the in-kernel MXU matmul:
        # C_T (4, 8) = [exp_At^T | (B@exp_At)^T | -des^T | 0]
        self.coef_plus = self._build_coef(self.des_plus)
        self.coef_minus = self._build_coef(self.des_minus)

        # NOTE: stance_sign is mutated in Python (mirrors the PyTorch module);
        # this is not jit-pure — under jit, pass the stance sign as an argument.
        self.stance_sign = ind.stance_leg

    def _build_coef(self, des):
        return jnp.concatenate(
            [self.exp_At.T, self.b_exp_At.T, -des.T,
             jnp.zeros((4, 1), jnp.float32)], axis=1)              # (4, 8)

    def __call__(self, state, u):
        coef = self.coef_plus if self.stance_sign == 1 else self.coef_minus
        out = alip_forward(state, u, coef, block_batch=self.block_batch,
                           use_pallas=self.use_pallas)
        self.stance_sign = -self.stance_sign
        return out


# ----------------------------------------------------------------------------
# Driver
# ----------------------------------------------------------------------------
if __name__ == "__main__":
    Ns, Nt, n_batch = 4, 4, 8
    ind = InData()
    # use_pallas=True forces the Pallas path even at tiny batch (demo).
    model = ALIPErrorModel(Ns, Nt, ind, n_batch, use_pallas=True)

    key = jax.random.PRNGKey(0)
    k1, k2 = jax.random.split(key)
    state = jax.random.normal(k1, (n_batch, 4), dtype=jnp.float32)
    u = jax.random.normal(k2, (n_batch, 2), dtype=jnp.float32)

    out1 = jax.block_until_ready(model(state, u))   # stance_sign == +1 branch
    out2 = jax.block_until_ready(model(out1, u))    # stance_sign == -1 branch

    # float64 numpy reference of the original (un-folded) forward pass.
    s64 = np.asarray(state, np.float64)
    u64 = np.asarray(u, np.float64)
    B64 = np.asarray(model.B, np.float64)
    E64 = np.asarray(model.exp_At, np.float64)
    dp = np.asarray(model.des_plus, np.float64)
    dm = np.asarray(model.des_minus, np.float64)
    ref1 = (s64 + u64 @ B64) @ E64 - dp
    ref2 = (np.asarray(out1, np.float64) + u64 @ B64) @ E64 - dm

    assert out1.shape == (n_batch, 4) and out2.shape == (n_batch, 4)
    assert np.allclose(np.asarray(out1), ref1, atol=1e-4, rtol=1e-4)
    assert np.allclose(np.asarray(out2), ref2, atol=1e-4, rtol=1e-4)

    # Second check: non-multiple-of-128 batch exercising lane padding, still
    # through the Pallas path.
    nb2 = 300
    model2 = ALIPErrorModel(Ns, Nt, ind, nb2, use_pallas=True)
    k3, k4 = jax.random.split(k2)
    s2 = jax.random.normal(k3, (nb2, 4), dtype=jnp.float32)
    u2 = jax.random.normal(k4, (nb2, 2), dtype=jnp.float32)
    o2 = jax.block_until_ready(model2(s2, u2))
    ref3 = (np.asarray(s2, np.float64)
            + np.asarray(u2, np.float64) @ B64) @ E64 - dp
    assert o2.shape == (nb2, 4)
    assert np.allclose(np.asarray(o2), ref3, atol=1e-4, rtol=1e-4)

    print("KERNEL_OK")
</pallas_src>

<mosaic_0001>
module attributes {stable_mosaic.version = 11 : i64} {
  func.func @alip_forward_kernel(%arg0: i32, %arg1: memref<8x128xf32, #tpu.memory_space<vmem>>, %arg2: memref<4x8xf32, #tpu.memory_space<vmem>>, %arg3: memref<4x128xf32, #tpu.memory_space<vmem>>) attributes {dimension_semantics = [#tpu.dimension_semantics<parallel>], iteration_bounds = array<i64: 1>, scalar_prefetch = 0 : i64, scratch_operands = 0 : i64, tpu.core_type = #tpu.core_type<tc>, window_params = [{transform_indices = @transform_0, window_bounds = array<i64: 8, 128>}, {pipeline_mode = #tpu.pipeline_mode<synchronous>, transform_indices = @transform_1, window_bounds = array<i64: 4, 8>}, {transform_indices = @transform_2, window_bounds = array<i64: 4, 128>}]} {
    %c0 = arith.constant 0 : index
    %c0_0 = arith.constant 0 : index
    %0 = vector.load %arg2[%c0, %c0_0] : memref<4x8xf32, #tpu.memory_space<vmem>>, vector<4x8xf32>
    %c0_1 = arith.constant 0 : index
    %c0_2 = arith.constant 0 : index
    %1 = vector.load %arg1[%c0_1, %c0_2] : memref<8x128xf32, #tpu.memory_space<vmem>>, vector<8x128xf32>
    %cst = arith.constant dense<0.000000e+00> : vector<4x128xf32>
    %2 = tpu.matmul %0, %1, %cst {dimension_numbers = #tpu.dot_dimension_numbers<[1], [0], [0], [1], [0, 0, 1, 1], [], []>, precision = #tpu.contract_precision<fp32>} : vector<4x8xf32>, vector<8x128xf32>, vector<4x128xf32> -> vector<4x128xf32>
    %c0_3 = arith.constant 0 : index
    %c0_4 = arith.constant 0 : index
    %3 = vector.load %arg3[%c0_3, %c0_4] : memref<4x128xf32, #tpu.memory_space<vmem>>, vector<4x128xf32>
    tpu.vector_store %arg3[%c0_3, %c0_4], %2 {strides = array<i32>} : memref<4x128xf32, #tpu.memory_space<vmem>>, vector<4x128xf32>,
    return
  }
  func.func @transform_0(%arg0: i32) -> (i32, i32) {
    %c0_i32 = arith.constant 0 : i32
    %c0_i32_0 = arith.constant 0 : i32
    return %c0_i32, %arg0 : i32, i32
  }
  func.func @transform_1(%arg0: i32) -> (i32, i32) {
    %c0_i32 = arith.constant 0 : i32
    %c0_i32_0 = arith.constant 0 : i32
    %c0_i32_1 = arith.constant 0 : i32
    return %c0_i32, %c0_i32_0 : i32, i32
  }
  func.func @transform_2(%arg0: i32) -> (i32, i32) {
    %c0_i32 = arith.constant 0 : i32
    %c0_i32_0 = arith.constant 0 : i32
    return %c0_i32, %arg0 : i32, i32
  }
}

</mosaic_0001>

<bundles_post_ra>
// kernel: tpu_custom_call.1
= control target key start
LH: loop header
LB: loop body
LE: loop exit
PB: predicated region body
PF: predicated region fallthrough
CT: control target
= control target key end

     0   :  { %7 = vsyncpa [#allocation3], 0  ;;  %s653_s0 = inlined_call_operand.hbm [shape: f32[8,128], index: 0, kind: input, shape index: {}]   ;;  %s654_s1 = inlined_call_operand.hbm [shape: f32[4,8], index: 1, kind: input, shape index: {}]   ;;  %s655_s2 = inlined_call_operand.hbm [shape: f32[4,128], index: 2, kind: output, shape index: {}]  }
   0x1   :  { %8 = vsyncpa [#allocation6], 0 }
   0x2   :  { %9 = vsyncpa [#allocation4], 0  ;;  %s618_s9 = smov [#allocation2]   ;;  %s619_s11 = smov [#allocation5]  }
   0x3   :  { %s16_s10 = sshll.u32 %s618_s9, 4  ;;  %s26_s12 = sshll.u32 %s619_s11, 4  ;;  %s17_s10 = int_to_ptr.vmem [resolvable:$true] %s16_s10  ;;  %s27_s12 = int_to_ptr.vmem [resolvable:$true] %s26_s12 }
   0x4   :  { %s560_s13 = scalar_lea.vmem %s17_s10, 128  ;;  %p565_p1 = scmp.lt.s32.totalorder %s17_s10, %s17_s10 }
   0x5   :  { %p561_p0 = scmp.ne.s32.totalorder %s17_s10, %s560_s13  ;;  %p566_p2 = scmp.lt.s32.totalorder %s560_s13, %s560_s13 }
   0x7   :  { %p567_p3 = por %p566_p2, %p565_p1 }
   0x9   :  { %p568_p4 = pnand %p567_p3, %p561_p0 }
   0xb   :  { %571 = shalt.err (!%p568_p4)
}
   0xc   :  { %19 = dma.hbm_to_vmem [thread:$0]  %s653_s0, 128, %s17_s10, [#allocation3]  }
   0xd   :  { %s580_s16 = scalar_lea.vmem %s27_s12, 64  ;;  %p585_p6 = scmp.lt.s32.totalorder %s27_s12, %s27_s12 }
   0xe   :  { %p581_p5 = scmp.ne.s32.totalorder %s27_s12, %s580_s16  ;;  %p586_p7 = scmp.lt.s32.totalorder %s580_s16, %s580_s16 }
  0x10   :  { %p587_p8 = por %p586_p7, %p585_p6 }
  0x12   :  { %p588_p9 = pnand %p587_p8, %p581_p5 }
  0x14   :  { %591 = shalt.err (!%p588_p9)
}
  0x15   :  { %29 = dma.hbm_to_vmem [thread:$0]  %s654_s1, 64, %s27_s12, [#allocation6]  }
  0x16   :  { %612 = dma.done.wait [#allocation3], 128  }
  0x17   :  { %613 = vsyncadd [#allocation3], 4294967168 }
  0x18   :  { %614 = dma.done.wait [#allocation6], 64  }
  0x19   :  { %615 = vsyncadd [#allocation6], 4294967232  ;;  %v620_v0 = vmov 0.0   ;;  %vm621_vm0 = vmmov 0   ;;  %vm38_vm1 = vcmask 64512   ;;  %v37_v1 = vld [vmem:[#allocation2] sm:$0xff] }
  0x1a   :  { %517 = vmatprep.subr.mxu0 %v620_v0  ;;  %522 = vmatprep.subr.mxu1 %v620_v0  ;;  %v36_v2 = vld [vmem:[#allocation5] sm:$0xf]  ;;  %v73_v3 = vand.u32 4294901760, %v37_v1  ;;  %s622_s0 = smov [#allocation7]  }
  0x1b   :  { %519 = vmatprep.mubr.msk.f32.mxu0 %vm621_vm0, %v620_v0  ;;  %524 = vmatprep.mubr.msk.f32.mxu1 %vm621_vm0, %v620_v0  ;;  %v40_v4 = vsel %vm38_vm1, %v36_v2, 0  ;;  %s495_s1 = sshll.u32 %s622_s0, 4  ;;  %s496_s1 = int_to_ptr.vmem [resolvable:$true] %s495_s1 }
  0x1c   :  { %v108_v5 = vand.u32 4294901760, %v40_v4  ;;  %518 = vmatpush3.msra.mxu0 %v73_v3  ;;  %v150_v6 = vsub.f32 %v37_v1, %v73_v3  ;;  %s592_s19 = scalar_lea.vmem %s496_s1, 64  ;;  %p597_p11 = scmp.lt.s32.totalorder %s496_s1, %s496_s1 }
  0x1d   :  { %527 = vmatprep.subr.mxu0 %v620_v0  ;;  %p593_p10 = scmp.ne.s32.totalorder %s496_s1, %s592_s19  ;;  %p598_p12 = scmp.lt.s32.totalorder %s592_s19, %s592_s19 }
  0x1e   :  { %v109_v7 = vsub.f32 %v40_v4, %v108_v5  ;;  %v151_v8 = vand.u32 4294901760, %v150_v6 }
  0x1f   :  { %p599_p13 = por %p598_p12, %p597_p11 }
  0x20   :  { %v110_v9 = vand.u32 4294901760, %v109_v7  ;;  %v152_v10 = vsub.f32 %v150_v6, %v151_v8 }
  0x21   :  { %p600_p0 = pnand %p599_p13, %p593_p10 }
  0x22   :  { %v111_v11 = vsub.f32 %v109_v7, %v110_v9  ;;  %v153_v12 = vand.u32 4294901760, %v152_v10 }
  0x24   :  { %v112_v13 = vand.u32 4294901760, %v111_v11  ;;  %523 = vmatpush3.msra.mxu1 %v153_v12 }
  0x25   :  { %525 = vmatmul.mubr.f32.vlgmr.msra.gmra.mxu1 %v108_v5  ;;  %532 = vmatprep.subr.mxu1 %v620_v0 }
  0x26   :  { %520 = vmatmul.mubr.f32.vlgmr.msra.gmra.mxu0 %v112_v13  ;;  %533 = vmatpush3.msra.mxu1 %v73_v3 }
  0x27   :  { %528 = vmatpush3.msra.mxu0 %v150_v6  ;;  %529 = vmatprep.mubr.msk.f32.mxu0 %vm621_vm0, %v620_v0 }
  0x28   :  { %534 = vmatprep.mubr.msk.f32.mxu1 %vm621_vm0, %v620_v0  ;;  %537 = vmatprep.subr.mxu0 %v620_v0 }
  0x29   :  { %535 = vmatmul.mubr.f32.vlgmr.msra.gmra.mxu1 %v110_v9  ;;  %542 = vmatprep.subr.mxu1 %v620_v0 }
  0x2a   :  { %530 = vmatmul.mubr.f32.vlgmr.msra.gmra.mxu0 %v109_v7  ;;  %543 = vmatpush3.msra.mxu1 %v73_v3 }
  0x2b   :  { %538 = vmatpush3.msra.mxu0 %v151_v8  ;;  %539 = vmatprep.mubr.msk.f32.mxu0 %vm621_vm0, %v620_v0 }
  0x2c   :  { %544 = vmatprep.mubr.msk.f32.mxu1 %vm621_vm0, %v620_v0 }
  0x2d   :  { %545 = vmatmul.mubr.f32.vlgmr.msra.gmra.mxu1 %v108_v5 }
  0x2e   :  { %540 = vmatmul.mubr.f32.vlgmr.msra.gmra.mxu0 %v108_v5 }
  0xe5   :  { %v190_v15 = vpop.f32.mrf.mxu1 }
  0xe6   :  { %v114_v14 = vpop.f32.mrf.mxu0 }
  0xe7   :  { %v526_v17 = vpop.f32.mrf.mxu1  ;;  %v191_v18 = vadd.f32 %v190_v15, %v114_v14 }
  0xe8   :  { %v521_v16 = vpop.f32.mrf.mxu0 }
  0xe9   :  { %v338_v20 = vpop.f32.mrf.mxu1 }
  0xea   :  { %v264_v19 = vpop.f32.mrf.mxu0 }
  0xeb   :  { %v265_v21 = vadd.f32 %v264_v19, %v191_v18  ;;  %v536_v23 = vpop.f32.mrf.mxu1 }
  0xec   :  { %v531_v22 = vpop.f32.mrf.mxu0 }
  0xed   :  { %v339_v24 = vadd.f32 %v338_v20, %v265_v21  ;;  %v484_v26 = vpop.f32.mrf.mxu1 }
  0xee   :  { %v412_v25 = vpop.f32.mrf.mxu0 }
  0xef   :  { %v413_v27 = vadd.f32 %v412_v25, %v339_v24  ;;  %v546_v29 = vpop.f32.mrf.mxu1 }
  0xf0   :  { %v541_v28 = vpop.f32.mrf.mxu0 }
  0xf1   :  { %v485_v30 = vadd.f32 %v484_v26, %v413_v27 }
  0xf3   :  { %488 = vst [vmem:[#allocation7] sm:$0xf] %v485_v30 }
  0xf4   :  { %603 = shalt.err (!%p600_p0)
}
  0xf5   :  { %498 = dma.vmem_to_hbm [thread:$0]  %s496_s1, 64, %s655_s2, [#allocation4]  }
  0xf6   :  { %616 = dma.done.wait [#allocation4], 64  }
  0xf7   :  { %617 = vsyncadd [#allocation4], 4294967232 }
  0xf8   :  { %502 = vsyncpa [#allocation3], 1 }
  0xf9   :  { %503 = vsyncpa [#allocation6], 1 }
  0xfa   :  { %504 = vsyncpa [#allocation4], 1 }

</bundles_post_ra>
